<compile_context>
chip_gen: v5e
topology: v5e:2x2
jax: 0.10.0
libtpu: 0.0.40
codegen_flags: <defaults>
</compile_context>

<pallas_src>
import functools

import numpy as np

import jax
import jax.numpy as jnp
from jax.experimental import pallas as pl
from jax.experimental.pallas import tpu as pltpu


_MXU_MIN_CIN = 64  # below this the 256-wide v6e/v7x MXU runs at single-digit
                   # utilization; use the lane-dense VPU scaled-add path.


# ----------------------------------------------------------------------------
# In-kernel helpers (pure jnp; operate on values already loaded from VMEM).
# ----------------------------------------------------------------------------
def _roll_flat(x, s):
    """y[:, p] = x[:, (p + s) mod P] for static s, via an XLU lane rotate."""
    P = x.shape[-1]
    amt = (-s) % P                      # np.roll convention: out[p] = in[p - shift]
    if amt == 0:
        return x
    return pltpu.roll(x, shift=amt, axis=1)


def _pointwise(x, w):
    """1x1 conv in (C, P) layout: out[co, p] = sum_ci w[co, ci] * x[ci, p]."""
    if w.dtype == jnp.bfloat16:
        # Large-channel path: bf16 operands (pre-cast in the wrapper), f32
        # accumulation on the MXU.
        return jnp.dot(w, x.astype(jnp.bfloat16),
                       preferred_element_type=jnp.float32)
    _, cin = w.shape
    # Small contraction: lane-dense VPU scaled adds.
    acc = w[:, 0:1] * x[0:1, :]
    for ci in range(1, cin):
        acc = acc + w[:, ci:ci + 1] * x[ci:ci + 1, :]
    return acc


def _depthwise3x3(x, dw, W, masks):
    """Depthwise 3x3, padding=1, on a flattened (C, P) image (P >= H*W).

    dw: (C, 9) taps in (ky, kx) row-major order.
    masks: (not_last_col, not_first_col, not_last_row, not_first_row), (1, P).
    Each tap is an XLU roll of the flat image.  Column pre-masks (which also
    zero the HW-pad region) kill W-boundary / pad wrap reads for dx = +-1;
    row post-masks applied once per dy-group kill the H-boundary rows.
    """
    nlc, nfc, nlr, nfr = masks
    src = {-1: x * nlc, 0: x, 1: x * nfc}

    def dy_group(dy):
        g = None
        for dx in (-1, 0, 1):
            k = (dy + 1) * 3 + (dx + 1)
            t = _roll_flat(src[dx], dy * W + dx) * dw[:, k:k + 1]
            g = t if g is None else g + t
        return g

    out = dy_group(0)
    out = out + dy_group(-1) * nfr      # reads row y-1: invalid at row 0
    out = out + dy_group(1) * nlr       # reads row y+1: invalid at row H-1
    return out


# ----------------------------------------------------------------------------
# Pallas kernel: B images per grid step, everything lane-dense in VMEM.
# ----------------------------------------------------------------------------
def _res_double_convds_kernel(x_ref, mask_ref, w1_ref, pwa_ref, pwb_ref,
                              dwa_ref, dwb_ref, bias_ref, out_ref, *, W):
    masks = tuple(mask_ref[i:i + 1, :] for i in range(4))
    bias = bias_ref[...]                                    # (Cout, 3) packed
    w1, pwa, pwb = w1_ref[...], pwa_ref[...], pwb_ref[...]
    dwa, dwb = dwa_ref[...], dwb_ref[...]

    B = x_ref.shape[0]
    for b in range(B):
        x = x_ref[b].astype(jnp.float32)                    # (Cin, P)

        # DS conv A: depthwise 3x3 (Cin) -> pointwise Cin->Cout (BN/bias folded) -> ReLU.
        d = _depthwise3x3(x, dwa, W, masks)
        a = jnp.maximum(_pointwise(d, pwa) + bias[:, 1:2], 0.0)

        # DS conv B: depthwise 3x3 (Cout) -> pointwise Cout->Cout (folded) -> ReLU.
        d = _depthwise3x3(a, dwb, W, masks)
        y = jnp.maximum(_pointwise(d, pwb) + bias[:, 2:3], 0.0)

        # Residual 1x1 last: keeps the (usually smaller) Cin-wide x live across
        # DS conv B instead of a Cout-wide residual -> smaller peak VMEM.
        y = y + _pointwise(x, w1) + bias[:, 0:1]

        out_ref[b] = y.astype(out_ref.dtype)


# ----------------------------------------------------------------------------
# Parameter folding (PyTorch layout -> kernel layout, BN + dw-bias folded).
# ----------------------------------------------------------------------------
def _prepare_kernel_params(p, eps=1e-5):
    Cout, Cin = p["w1x1"].shape[0], p["w1x1"].shape[1]

    w1 = p["w1x1"][:, :, 0, 0]                              # (Cout, Cin)
    b1 = p["b1x1"]                                          # (Cout,)

    def fold(dw_b, pw_w4, pw_b, g, b, m, v):
        w = pw_w4[:, :, 0, 0]                               # (Cout, Cin_dw)
        scale = g / jnp.sqrt(v + eps)
        off = b - m * scale
        w_f = w * scale[:, None]
        b_f = (pw_b + w @ dw_b) * scale + off
        return w_f, b_f

    pwA, bA = fold(p["dwA_b"], p["pwA_w"], p["pwA_b"],
                   p["bnA_g"], p["bnA_b"], p["bnA_m"], p["bnA_v"])
    pwB, bB = fold(p["dwB_b"], p["pwB_w"], p["pwB_b"],
                   p["bnB_g"], p["bnB_b"], p["bnB_m"], p["bnB_v"])

    dwA = p["dwA_w"][:, 0].reshape(Cin, 9)                  # (Cin, 9), (ky,kx) row-major
    dwB = p["dwB_w"][:, 0].reshape(Cout, 9)                 # (Cout, 9)
    bias_pack = jnp.stack([b1, bA, bB], axis=1)             # (Cout, 3)

    def maybe_bf16(w):
        # Pre-cast only when the MXU path will be used, removing per-step casts.
        # TODO(synk): validate bf16 MXU accuracy for very large channel counts.
        return w.astype(jnp.bfloat16) if w.shape[1] >= _MXU_MIN_CIN else w

    return maybe_bf16(w1), maybe_bf16(pwA), maybe_bf16(pwB), dwA, dwB, bias_pack


def _make_masks(H, W, P):
    """(4, P) f32: [not_last_col&valid, not_first_col&valid, not_last_row, not_first_row]."""
    p = np.arange(P)
    col, row = p % W, p // W
    valid = p < H * W
    m = np.stack([
        (col != W - 1) & valid,     # pre-mask for taps reading (w-1)
        (col != 0) & valid,         # pre-mask for taps reading (w+1)
        (row != H - 1),             # post-mask for the dy=+1 group
        (row != 0),                 # post-mask for the dy=-1 group
    ]).astype(np.float32)
    return jnp.asarray(m)


def _pick_imgs_per_step(N):
    # Amortize the ~0.35 us per-grid-step overhead for tiny images while keeping
    # at least 2 grid steps so v7x's two TensorCores both get work.
    for b in (4, 2):
        if N % b == 0 and N // b >= 2:
            return b
    return 1


# ----------------------------------------------------------------------------
# Wrapper
# ----------------------------------------------------------------------------
def res_double_convds(x_nchw, params, *, imgs_per_step=None):
    """x_nchw: (N, Cin, H, W) float32 (PyTorch NCHW). Returns (N, Cout, H, W)."""
    N, Cin, H, W = x_nchw.shape
    Cout = params["w1x1"].shape[0]
    HW = H * W
    P = ((HW + 127) // 128) * 128          # lane-dense padded flat width
    pad = P - HW

    B = imgs_per_step if imgs_per_step is not None else _pick_imgs_per_step(N)
    assert N % B == 0

    # Free view: channels -> sublanes, flat spatial -> lanes; zero-pad to 128-lanes.
    x = x_nchw.reshape(N, Cin, HW)
    if pad:
        x = jnp.pad(x, ((0, 0), (0, 0), (0, pad)))

    masks = _make_masks(H, W, P)
    weights = list(_prepare_kernel_params(params))

    def const_spec(a):
        nd = a.ndim
        return pl.BlockSpec(a.shape, lambda n, _nd=nd: (0,) * _nd)

    in_specs = [pl.BlockSpec((B, Cin, P), lambda n: (n, 0, 0)), const_spec(masks)]
    in_specs += [const_spec(w) for w in weights]
    out_specs = pl.BlockSpec((B, Cout, P), lambda n: (n, 0, 0))

    # VMEM budget: double-buffered in/out blocks + constants + ~12 live f32
    # full-width temporaries per in-flight image, capped below v7x's 64 MiB/TC.
    f32 = 4
    block_bytes = f32 * P * B * (Cin + Cout)
    fixed_bytes = f32 * (sum(int(w.size) for w in weights) + int(masks.size))
    live_bytes = f32 * P * max(Cin, Cout) * 12
    vmem_limit = 2 * block_bytes + 2 * fixed_bytes + live_bytes + (4 << 20)
    vmem_limit = int(min(max(vmem_limit, 16 << 20), 48 << 20))

    out = pl.pallas_call(
        functools.partial(_res_double_convds_kernel, W=W),
        out_shape=jax.ShapeDtypeStruct((N, Cout, P), jnp.float32),
        grid_spec=pltpu.PrefetchScalarGridSpec(
            num_scalar_prefetch=0,
            grid=(N // B,),
            in_specs=in_specs,
            out_specs=out_specs,
        ),
        compiler_params=pltpu.CompilerParams(
            dimension_semantics=("parallel",),
            vmem_limit_bytes=vmem_limit,
        ),
    )(x, masks, *weights)

    if pad:
        out = out[:, :, :HW]
    return out.reshape(N, Cout, H, W)


# ----------------------------------------------------------------------------
# Deterministic parameters in PyTorch layout.
# ----------------------------------------------------------------------------
def init_params(key, in_channels, out_channels):
    Cin, Cout = in_channels, out_channels
    ks = jax.random.split(key, 18)

    def u(k, shape, scale=0.3):
        return jax.random.uniform(k, shape, jnp.float32, -1.0, 1.0) * scale

    return {
        # nn.Conv2d(Cin, Cout, 1)
        "w1x1": u(ks[0], (Cout, Cin, 1, 1)), "b1x1": u(ks[1], (Cout,)),
        # DS conv A: depthwise (Cin,1,3,3), pointwise (Cout,Cin,1,1), BN(Cout)
        "dwA_w": u(ks[2], (Cin, 1, 3, 3)), "dwA_b": u(ks[3], (Cin,)),
        "pwA_w": u(ks[4], (Cout, Cin, 1, 1)), "pwA_b": u(ks[5], (Cout,)),
        "bnA_g": 1.0 + u(ks[6], (Cout,), 0.1), "bnA_b": u(ks[7], (Cout,), 0.1),
        "bnA_m": u(ks[8], (Cout,), 0.1), "bnA_v": 1.0 + u(ks[9], (Cout,), 0.1),
        # DS conv B: depthwise (Cout,1,3,3), pointwise (Cout,Cout,1,1), BN(Cout)
        "dwB_w": u(ks[10], (Cout, 1, 3, 3)), "dwB_b": u(ks[11], (Cout,)),
        "pwB_w": u(ks[12], (Cout, Cout, 1, 1)), "pwB_b": u(ks[13], (Cout,)),
        "bnB_g": 1.0 + u(ks[14], (Cout,), 0.1), "bnB_b": u(ks[15], (Cout,), 0.1),
        "bnB_m": u(ks[16], (Cout,), 0.1), "bnB_v": 1.0 + u(ks[17], (Cout,), 0.1),
    }


# ----------------------------------------------------------------------------
# Independent pure-JAX reference (lax conv primitives, NCHW, eval-mode BN).
# ----------------------------------------------------------------------------
def reference(x, p, eps=1e-5):
    dn = ("NCHW", "OIHW", "NCHW")

    def conv(inp, w, b, groups=1, pad=0):
        y = jax.lax.conv_general_dilated(
            inp, w, window_strides=(1, 1), padding=[(pad, pad), (pad, pad)],
            dimension_numbers=dn, feature_group_count=groups)
        return y + b[None, :, None, None]

    def bn(y, g, b, m, v):
        g, b, m, v = (a[None, :, None, None] for a in (g, b, m, v))
        return g * (y - m) / jnp.sqrt(v + eps) + b

    Cin = x.shape[1]

    x1 = conv(x, p["w1x1"], p["b1x1"])
    t = conv(x, p["dwA_w"], p["dwA_b"], groups=Cin, pad=1)
    t = conv(t, p["pwA_w"], p["pwA_b"])
    t = jnp.maximum(bn(t, p["bnA_g"], p["bnA_b"], p["bnA_m"], p["bnA_v"]), 0.0)
    Cout = t.shape[1]
    t = conv(t, p["dwB_w"], p["dwB_b"], groups=Cout, pad=1)
    t = conv(t, p["pwB_w"], p["pwB_b"])
    t = jnp.maximum(bn(t, p["bnB_g"], p["bnB_b"], p["bnB_m"], p["bnB_v"]), 0.0)
    return x1 + t


if __name__ == "__main__":
    N, Cin, Cout, H, W = 2, 4, 8, 16, 16

    key = jax.random.PRNGKey(0)
    kx, kp = jax.random.split(key)
    x = jax.random.normal(kx, (N, Cin, H, W), jnp.float32)   # PyTorch NCHW
    params = init_params(kp, Cin, Cout)

    out = jax.block_until_ready(res_double_convds(x, params))
    ref = jax.block_until_ready(reference(x, params))

    assert out.shape == (N, Cout, H, W)
    err = float(jnp.max(jnp.abs(out - ref)))
    assert jnp.allclose(out, ref, rtol=2e-3, atol=2e-3), err

    print("KERNEL_OK")
</pallas_src>

<mosaic_0001>
module attributes {stable_mosaic.version = 11 : i64} {
  func.func @_res_double_convds_kernel(%arg0: i32, %arg1: memref<1x4x256xf32, #tpu.memory_space<vmem>>, %arg2: memref<4x256xf32, #tpu.memory_space<vmem>>, %arg3: memref<8x4xf32, #tpu.memory_space<vmem>>, %arg4: memref<8x4xf32, #tpu.memory_space<vmem>>, %arg5: memref<8x8xf32, #tpu.memory_space<vmem>>, %arg6: memref<4x9xf32, #tpu.memory_space<vmem>>, %arg7: memref<8x9xf32, #tpu.memory_space<vmem>>, %arg8: memref<8x3xf32, #tpu.memory_space<vmem>>, %arg9: memref<1x8x256xf32, #tpu.memory_space<vmem>>) attributes {dimension_semantics = [#tpu.dimension_semantics<parallel>], iteration_bounds = array<i64: 2>, scalar_prefetch = 0 : i64, scratch_operands = 0 : i64, tpu.core_type = #tpu.core_type<tc>, window_params = [{transform_indices = @transform_0, window_bounds = array<i64: 1, 4, 256>}, {pipeline_mode = #tpu.pipeline_mode<synchronous>, transform_indices = @transform_1, window_bounds = array<i64: 4, 256>}, {pipeline_mode = #tpu.pipeline_mode<synchronous>, transform_indices = @transform_2, window_bounds = array<i64: 8, 4>}, {pipeline_mode = #tpu.pipeline_mode<synchronous>, transform_indices = @transform_3, window_bounds = array<i64: 8, 4>}, {pipeline_mode = #tpu.pipeline_mode<synchronous>, transform_indices = @transform_4, window_bounds = array<i64: 8, 8>}, {pipeline_mode = #tpu.pipeline_mode<synchronous>, transform_indices = @transform_5, window_bounds = array<i64: 4, 9>}, {pipeline_mode = #tpu.pipeline_mode<synchronous>, transform_indices = @transform_6, window_bounds = array<i64: 8, 9>}, {pipeline_mode = #tpu.pipeline_mode<synchronous>, transform_indices = @transform_7, window_bounds = array<i64: 8, 3>}, {transform_indices = @transform_8, window_bounds = array<i64: 1, 8, 256>}]} {
    %c0 = arith.constant 0 : index
    %c0_0 = arith.constant 0 : index
    %0 = vector.load %arg2[%c0, %c0_0] : memref<4x256xf32, #tpu.memory_space<vmem>>, vector<1x256xf32>
    %c1 = arith.constant 1 : index
    %c0_1 = arith.constant 0 : index
    %1 = vector.load %arg2[%c1, %c0_1] : memref<4x256xf32, #tpu.memory_space<vmem>>, vector<1x256xf32>
    %c2 = arith.constant 2 : index
    %c0_2 = arith.constant 0 : index
    %2 = vector.load %arg2[%c2, %c0_2] : memref<4x256xf32, #tpu.memory_space<vmem>>, vector<1x256xf32>
    %c3 = arith.constant 3 : index
    %c0_3 = arith.constant 0 : index
    %3 = vector.load %arg2[%c3, %c0_3] : memref<4x256xf32, #tpu.memory_space<vmem>>, vector<1x256xf32>
    %c0_4 = arith.constant 0 : index
    %c0_5 = arith.constant 0 : index
    %4 = vector.load %arg8[%c0_4, %c0_5] : memref<8x3xf32, #tpu.memory_space<vmem>>, vector<8x3xf32>
    %c0_6 = arith.constant 0 : index
    %c0_7 = arith.constant 0 : index
    %5 = vector.load %arg3[%c0_6, %c0_7] : memref<8x4xf32, #tpu.memory_space<vmem>>, vector<8x4xf32>
    %c0_8 = arith.constant 0 : index
    %c0_9 = arith.constant 0 : index
    %6 = vector.load %arg4[%c0_8, %c0_9] : memref<8x4xf32, #tpu.memory_space<vmem>>, vector<8x4xf32>
    %c0_10 = arith.constant 0 : index
    %c0_11 = arith.constant 0 : index
    %7 = vector.load %arg5[%c0_10, %c0_11] : memref<8x8xf32, #tpu.memory_space<vmem>>, vector<8x8xf32>
    %c0_12 = arith.constant 0 : index
    %c0_13 = arith.constant 0 : index
    %8 = vector.load %arg6[%c0_12, %c0_13] : memref<4x9xf32, #tpu.memory_space<vmem>>, vector<4x9xf32>
    %c0_14 = arith.constant 0 : index
    %c0_15 = arith.constant 0 : index
    %9 = vector.load %arg7[%c0_14, %c0_15] : memref<8x9xf32, #tpu.memory_space<vmem>>, vector<8x9xf32>
    %c0_16 = arith.constant 0 : index
    %c0_17 = arith.constant 0 : index
    %c0_18 = arith.constant 0 : index
    %10 = vector.load %arg1[%c0_16, %c0_17, %c0_18] : memref<1x4x256xf32, #tpu.memory_space<vmem>>, vector<1x4x256xf32>
    %11 = vector.shape_cast %10 : vector<1x4x256xf32> to vector<4x256xf32>
    %12 = vector.broadcast %0 : vector<1x256xf32> to vector<4x256xf32>
    %13 = arith.mulf %11, %12 : vector<4x256xf32>
    %14 = vector.broadcast %1 : vector<1x256xf32> to vector<4x256xf32>
    %15 = arith.mulf %11, %14 : vector<4x256xf32>
    %c1_i32 = arith.constant 1 : i32
    %16 = tpu.dynamic_rotate %13 by %c1_i32 dim 1 : vector<4x256xf32>, i32 -> vector<4x256xf32>
    %17 = vector.extract_strided_slice %8 {offsets = [0, 3], sizes = [4, 1], strides = [1, 1]} : vector<4x9xf32> to vector<4x1xf32>
    %18 = vector.broadcast %17 : vector<4x1xf32> to vector<4x256xf32>
    %19 = arith.mulf %16, %18 : vector<4x256xf32>
    %20 = vector.extract_strided_slice %8 {offsets = [0, 4], sizes = [4, 1], strides = [1, 1]} : vector<4x9xf32> to vector<4x1xf32>
    %21 = vector.broadcast %20 : vector<4x1xf32> to vector<4x256xf32>
    %22 = arith.mulf %11, %21 : vector<4x256xf32>
    %23 = arith.addf %19, %22 : vector<4x256xf32>
    %c255_i32 = arith.constant 255 : i32
    %24 = tpu.dynamic_rotate %15 by %c255_i32 dim 1 : vector<4x256xf32>, i32 -> vector<4x256xf32>
    %25 = vector.extract_strided_slice %8 {offsets = [0, 5], sizes = [4, 1], strides = [1, 1]} : vector<4x9xf32> to vector<4x1xf32>
    %26 = vector.broadcast %25 : vector<4x1xf32> to vector<4x256xf32>
    %27 = arith.mulf %24, %26 : vector<4x256xf32>
    %28 = arith.addf %23, %27 : vector<4x256xf32>
    %c17_i32 = arith.constant 17 : i32
    %29 = tpu.dynamic_rotate %13 by %c17_i32 dim 1 : vector<4x256xf32>, i32 -> vector<4x256xf32>
    %30 = vector.extract_strided_slice %8 {offsets = [0, 0], sizes = [4, 1], strides = [1, 1]} : vector<4x9xf32> to vector<4x1xf32>
    %31 = vector.broadcast %30 : vector<4x1xf32> to vector<4x256xf32>
    %32 = arith.mulf %29, %31 : vector<4x256xf32>
    %c16_i32 = arith.constant 16 : i32
    %33 = tpu.dynamic_rotate %11 by %c16_i32 dim 1 : vector<4x256xf32>, i32 -> vector<4x256xf32>
    %34 = vector.extract_strided_slice %8 {offsets = [0, 1], sizes = [4, 1], strides = [1, 1]} : vector<4x9xf32> to vector<4x1xf32>
    %35 = vector.broadcast %34 : vector<4x1xf32> to vector<4x256xf32>
    %36 = arith.mulf %33, %35 : vector<4x256xf32>
    %37 = arith.addf %32, %36 : vector<4x256xf32>
    %c15_i32 = arith.constant 15 : i32
    %38 = tpu.dynamic_rotate %15 by %c15_i32 dim 1 : vector<4x256xf32>, i32 -> vector<4x256xf32>
    %39 = vector.extract_strided_slice %8 {offsets = [0, 2], sizes = [4, 1], strides = [1, 1]} : vector<4x9xf32> to vector<4x1xf32>
    %40 = vector.broadcast %39 : vector<4x1xf32> to vector<4x256xf32>
    %41 = arith.mulf %38, %40 : vector<4x256xf32>
    %42 = arith.addf %37, %41 : vector<4x256xf32>
    %43 = vector.broadcast %3 : vector<1x256xf32> to vector<4x256xf32>
    %44 = arith.mulf %42, %43 : vector<4x256xf32>
    %45 = arith.addf %28, %44 : vector<4x256xf32>
    %c241_i32 = arith.constant 241 : i32
    %46 = tpu.dynamic_rotate %13 by %c241_i32 dim 1 : vector<4x256xf32>, i32 -> vector<4x256xf32>
    %47 = vector.extract_strided_slice %8 {offsets = [0, 6], sizes = [4, 1], strides = [1, 1]} : vector<4x9xf32> to vector<4x1xf32>
    %48 = vector.broadcast %47 : vector<4x1xf32> to vector<4x256xf32>
    %49 = arith.mulf %46, %48 : vector<4x256xf32>
    %c240_i32 = arith.constant 240 : i32
    %50 = tpu.dynamic_rotate %11 by %c240_i32 dim 1 : vector<4x256xf32>, i32 -> vector<4x256xf32>
    %51 = vector.extract_strided_slice %8 {offsets = [0, 7], sizes = [4, 1], strides = [1, 1]} : vector<4x9xf32> to vector<4x1xf32>
    %52 = vector.broadcast %51 : vector<4x1xf32> to vector<4x256xf32>
    %53 = arith.mulf %50, %52 : vector<4x256xf32>
    %54 = arith.addf %49, %53 : vector<4x256xf32>
    %c239_i32 = arith.constant 239 : i32
    %55 = tpu.dynamic_rotate %15 by %c239_i32 dim 1 : vector<4x256xf32>, i32 -> vector<4x256xf32>
    %56 = vector.extract_strided_slice %8 {offsets = [0, 8], sizes = [4, 1], strides = [1, 1]} : vector<4x9xf32> to vector<4x1xf32>
    %57 = vector.broadcast %56 : vector<4x1xf32> to vector<4x256xf32>
    %58 = arith.mulf %55, %57 : vector<4x256xf32>
    %59 = arith.addf %54, %58 : vector<4x256xf32>
    %60 = vector.broadcast %2 : vector<1x256xf32> to vector<4x256xf32>
    %61 = arith.mulf %59, %60 : vector<4x256xf32>
    %62 = arith.addf %45, %61 : vector<4x256xf32>
    %63 = vector.extract_strided_slice %6 {offsets = [0, 0], sizes = [8, 1], strides = [1, 1]} : vector<8x4xf32> to vector<8x1xf32>
    %64 = vector.extract_strided_slice %62 {offsets = [0, 0], sizes = [1, 256], strides = [1, 1]} : vector<4x256xf32> to vector<1x256xf32>
    %65 = vector.broadcast %63 : vector<8x1xf32> to vector<8x256xf32>
    %66 = vector.broadcast %64 : vector<1x256xf32> to vector<8x256xf32>
    %67 = arith.mulf %65, %66 : vector<8x256xf32>
    %68 = vector.extract_strided_slice %6 {offsets = [0, 1], sizes = [8, 1], strides = [1, 1]} : vector<8x4xf32> to vector<8x1xf32>
    %69 = vector.extract_strided_slice %62 {offsets = [1, 0], sizes = [1, 256], strides = [1, 1]} : vector<4x256xf32> to vector<1x256xf32>
    %70 = vector.broadcast %68 : vector<8x1xf32> to vector<8x256xf32>
    %71 = vector.broadcast %69 : vector<1x256xf32> to vector<8x256xf32>
    %72 = arith.mulf %70, %71 : vector<8x256xf32>
    %73 = arith.addf %67, %72 : vector<8x256xf32>
    %74 = vector.extract_strided_slice %6 {offsets = [0, 2], sizes = [8, 1], strides = [1, 1]} : vector<8x4xf32> to vector<8x1xf32>
    %75 = vector.extract_strided_slice %62 {offsets = [2, 0], sizes = [1, 256], strides = [1, 1]} : vector<4x256xf32> to vector<1x256xf32>
    %76 = vector.broadcast %74 : vector<8x1xf32> to vector<8x256xf32>
    %77 = vector.broadcast %75 : vector<1x256xf32> to vector<8x256xf32>
    %78 = arith.mulf %76, %77 : vector<8x256xf32>
    %79 = arith.addf %73, %78 : vector<8x256xf32>
    %80 = vector.extract_strided_slice %6 {offsets = [0, 3], sizes = [8, 1], strides = [1, 1]} : vector<8x4xf32> to vector<8x1xf32>
    %81 = vector.extract_strided_slice %62 {offsets = [3, 0], sizes = [1, 256], strides = [1, 1]} : vector<4x256xf32> to vector<1x256xf32>
    %82 = vector.broadcast %80 : vector<8x1xf32> to vector<8x256xf32>
    %83 = vector.broadcast %81 : vector<1x256xf32> to vector<8x256xf32>
    %84 = arith.mulf %82, %83 : vector<8x256xf32>
    %85 = arith.addf %79, %84 : vector<8x256xf32>
    %86 = vector.extract_strided_slice %4 {offsets = [0, 1], sizes = [8, 1], strides = [1, 1]} : vector<8x3xf32> to vector<8x1xf32>
    %87 = vector.broadcast %86 : vector<8x1xf32> to vector<8x256xf32>
    %88 = arith.addf %85, %87 : vector<8x256xf32>
    %cst = arith.constant 0.000000e+00 : f32
    %89 = vector.broadcast %cst : f32 to vector<8x256xf32>
    %90 = arith.maximumf %88, %89 : vector<8x256xf32>
    %91 = vector.broadcast %0 : vector<1x256xf32> to vector<8x256xf32>
    %92 = arith.mulf %90, %91 : vector<8x256xf32>
    %93 = vector.broadcast %1 : vector<1x256xf32> to vector<8x256xf32>
    %94 = arith.mulf %90, %93 : vector<8x256xf32>
    %c1_i32_19 = arith.constant 1 : i32
    %95 = tpu.dynamic_rotate %92 by %c1_i32_19 dim 1 : vector<8x256xf32>, i32 -> vector<8x256xf32>
    %96 = vector.extract_strided_slice %9 {offsets = [0, 3], sizes = [8, 1], strides = [1, 1]} : vector<8x9xf32> to vector<8x1xf32>
    %97 = vector.broadcast %96 : vector<8x1xf32> to vector<8x256xf32>
    %98 = arith.mulf %95, %97 : vector<8x256xf32>
    %99 = vector.extract_strided_slice %9 {offsets = [0, 4], sizes = [8, 1], strides = [1, 1]} : vector<8x9xf32> to vector<8x1xf32>
    %100 = vector.broadcast %99 : vector<8x1xf32> to vector<8x256xf32>
    %101 = arith.mulf %90, %100 : vector<8x256xf32>
    %102 = arith.addf %98, %101 : vector<8x256xf32>
    %c255_i32_20 = arith.constant 255 : i32
    %103 = tpu.dynamic_rotate %94 by %c255_i32_20 dim 1 : vector<8x256xf32>, i32 -> vector<8x256xf32>
    %104 = vector.extract_strided_slice %9 {offsets = [0, 5], sizes = [8, 1], strides = [1, 1]} : vector<8x9xf32> to vector<8x1xf32>
    %105 = vector.broadcast %104 : vector<8x1xf32> to vector<8x256xf32>
    %106 = arith.mulf %103, %105 : vector<8x256xf32>
    %107 = arith.addf %102, %106 : vector<8x256xf32>
    %c17_i32_21 = arith.constant 17 : i32
    %108 = tpu.dynamic_rotate %92 by %c17_i32_21 dim 1 : vector<8x256xf32>, i32 -> vector<8x256xf32>
    %109 = vector.extract_strided_slice %9 {offsets = [0, 0], sizes = [8, 1], strides = [1, 1]} : vector<8x9xf32> to vector<8x1xf32>
    %110 = vector.broadcast %109 : vector<8x1xf32> to vector<8x256xf32>
    %111 = arith.mulf %108, %110 : vector<8x256xf32>
    %c16_i32_22 = arith.constant 16 : i32
    %112 = tpu.dynamic_rotate %90 by %c16_i32_22 dim 1 : vector<8x256xf32>, i32 -> vector<8x256xf32>
    %113 = vector.extract_strided_slice %9 {offsets = [0, 1], sizes = [8, 1], strides = [1, 1]} : vector<8x9xf32> to vector<8x1xf32>
    %114 = vector.broadcast %113 : vector<8x1xf32> to vector<8x256xf32>
    %115 = arith.mulf %112, %114 : vector<8x256xf32>
    %116 = arith.addf %111, %115 : vector<8x256xf32>
    %c15_i32_23 = arith.constant 15 : i32
    %117 = tpu.dynamic_rotate %94 by %c15_i32_23 dim 1 : vector<8x256xf32>, i32 -> vector<8x256xf32>
    %118 = vector.extract_strided_slice %9 {offsets = [0, 2], sizes = [8, 1], strides = [1, 1]} : vector<8x9xf32> to vector<8x1xf32>
    %119 = vector.broadcast %118 : vector<8x1xf32> to vector<8x256xf32>
    %120 = arith.mulf %117, %119 : vector<8x256xf32>
    %121 = arith.addf %116, %120 : vector<8x256xf32>
    %122 = vector.broadcast %3 : vector<1x256xf32> to vector<8x256xf32>
    %123 = arith.mulf %121, %122 : vector<8x256xf32>
    %124 = arith.addf %107, %123 : vector<8x256xf32>
    %c241_i32_24 = arith.constant 241 : i32
    %125 = tpu.dynamic_rotate %92 by %c241_i32_24 dim 1 : vector<8x256xf32>, i32 -> vector<8x256xf32>
    %126 = vector.extract_strided_slice %9 {offsets = [0, 6], sizes = [8, 1], strides = [1, 1]} : vector<8x9xf32> to vector<8x1xf32>
    %127 = vector.broadcast %126 : vector<8x1xf32> to vector<8x256xf32>
    %128 = arith.mulf %125, %127 : vector<8x256xf32>
    %c240_i32_25 = arith.constant 240 : i32
    %129 = tpu.dynamic_rotate %90 by %c240_i32_25 dim 1 : vector<8x256xf32>, i32 -> vector<8x256xf32>
    %130 = vector.extract_strided_slice %9 {offsets = [0, 7], sizes = [8, 1], strides = [1, 1]} : vector<8x9xf32> to vector<8x1xf32>
    %131 = vector.broadcast %130 : vector<8x1xf32> to vector<8x256xf32>
    %132 = arith.mulf %129, %131 : vector<8x256xf32>
    %133 = arith.addf %128, %132 : vector<8x256xf32>
    %c239_i32_26 = arith.constant 239 : i32
    %134 = tpu.dynamic_rotate %94 by %c239_i32_26 dim 1 : vector<8x256xf32>, i32 -> vector<8x256xf32>
    %135 = vector.extract_strided_slice %9 {offsets = [0, 8], sizes = [8, 1], strides = [1, 1]} : vector<8x9xf32> to vector<8x1xf32>
    %136 = vector.broadcast %135 : vector<8x1xf32> to vector<8x256xf32>
    %137 = arith.mulf %134, %136 : vector<8x256xf32>
    %138 = arith.addf %133, %137 : vector<8x256xf32>
    %139 = vector.broadcast %2 : vector<1x256xf32> to vector<8x256xf32>
    %140 = arith.mulf %138, %139 : vector<8x256xf32>
    %141 = arith.addf %124, %140 : vector<8x256xf32>
    %142 = vector.extract_strided_slice %7 {offsets = [0, 0], sizes = [8, 1], strides = [1, 1]} : vector<8x8xf32> to vector<8x1xf32>
    %143 = vector.extract_strided_slice %141 {offsets = [0, 0], sizes = [1, 256], strides = [1, 1]} : vector<8x256xf32> to vector<1x256xf32>
    %144 = vector.broadcast %142 : vector<8x1xf32> to vector<8x256xf32>
    %145 = vector.broadcast %143 : vector<1x256xf32> to vector<8x256xf32>
    %146 = arith.mulf %144, %145 : vector<8x256xf32>
    %147 = vector.extract_strided_slice %7 {offsets = [0, 1], sizes = [8, 1], strides = [1, 1]} : vector<8x8xf32> to vector<8x1xf32>
    %148 = vector.extract_strided_slice %141 {offsets = [1, 0], sizes = [1, 256], strides = [1, 1]} : vector<8x256xf32> to vector<1x256xf32>
    %149 = vector.broadcast %147 : vector<8x1xf32> to vector<8x256xf32>
    %150 = vector.broadcast %148 : vector<1x256xf32> to vector<8x256xf32>
    %151 = arith.mulf %149, %150 : vector<8x256xf32>
    %152 = arith.addf %146, %151 : vector<8x256xf32>
    %153 = vector.extract_strided_slice %7 {offsets = [0, 2], sizes = [8, 1], strides = [1, 1]} : vector<8x8xf32> to vector<8x1xf32>
    %154 = vector.extract_strided_slice %141 {offsets = [2, 0], sizes = [1, 256], strides = [1, 1]} : vector<8x256xf32> to vector<1x256xf32>
    %155 = vector.broadcast %153 : vector<8x1xf32> to vector<8x256xf32>
    %156 = vector.broadcast %154 : vector<1x256xf32> to vector<8x256xf32>
    %157 = arith.mulf %155, %156 : vector<8x256xf32>
    %158 = arith.addf %152, %157 : vector<8x256xf32>
    %159 = vector.extract_strided_slice %7 {offsets = [0, 3], sizes = [8, 1], strides = [1, 1]} : vector<8x8xf32> to vector<8x1xf32>
    %160 = vector.extract_strided_slice %141 {offsets = [3, 0], sizes = [1, 256], strides = [1, 1]} : vector<8x256xf32> to vector<1x256xf32>
    %161 = vector.broadcast %159 : vector<8x1xf32> to vector<8x256xf32>
    %162 = vector.broadcast %160 : vector<1x256xf32> to vector<8x256xf32>
    %163 = arith.mulf %161, %162 : vector<8x256xf32>
    %164 = arith.addf %158, %163 : vector<8x256xf32>
    %165 = vector.extract_strided_slice %7 {offsets = [0, 4], sizes = [8, 1], strides = [1, 1]} : vector<8x8xf32> to vector<8x1xf32>
    %166 = vector.extract_strided_slice %141 {offsets = [4, 0], sizes = [1, 256], strides = [1, 1]} : vector<8x256xf32> to vector<1x256xf32>
    %167 = vector.broadcast %165 : vector<8x1xf32> to vector<8x256xf32>
    %168 = vector.broadcast %166 : vector<1x256xf32> to vector<8x256xf32>
    %169 = arith.mulf %167, %168 : vector<8x256xf32>
    %170 = arith.addf %164, %169 : vector<8x256xf32>
    %171 = vector.extract_strided_slice %7 {offsets = [0, 5], sizes = [8, 1], strides = [1, 1]} : vector<8x8xf32> to vector<8x1xf32>
    %172 = vector.extract_strided_slice %141 {offsets = [5, 0], sizes = [1, 256], strides = [1, 1]} : vector<8x256xf32> to vector<1x256xf32>
    %173 = vector.broadcast %171 : vector<8x1xf32> to vector<8x256xf32>
    %174 = vector.broadcast %172 : vector<1x256xf32> to vector<8x256xf32>
    %175 = arith.mulf %173, %174 : vector<8x256xf32>
    %176 = arith.addf %170, %175 : vector<8x256xf32>
    %177 = vector.extract_strided_slice %7 {offsets = [0, 6], sizes = [8, 1], strides = [1, 1]} : vector<8x8xf32> to vector<8x1xf32>
    %178 = vector.extract_strided_slice %141 {offsets = [6, 0], sizes = [1, 256], strides = [1, 1]} : vector<8x256xf32> to vector<1x256xf32>
    %179 = vector.broadcast %177 : vector<8x1xf32> to vector<8x256xf32>
    %180 = vector.broadcast %178 : vector<1x256xf32> to vector<8x256xf32>
    %181 = arith.mulf %179, %180 : vector<8x256xf32>
    %182 = arith.addf %176, %181 : vector<8x256xf32>
    %183 = vector.extract_strided_slice %7 {offsets = [0, 7], sizes = [8, 1], strides = [1, 1]} : vector<8x8xf32> to vector<8x1xf32>
    %184 = vector.extract_strided_slice %141 {offsets = [7, 0], sizes = [1, 256], strides = [1, 1]} : vector<8x256xf32> to vector<1x256xf32>
    %185 = vector.broadcast %183 : vector<8x1xf32> to vector<8x256xf32>
    %186 = vector.broadcast %184 : vector<1x256xf32> to vector<8x256xf32>
    %187 = arith.mulf %185, %186 : vector<8x256xf32>
    %188 = arith.addf %182, %187 : vector<8x256xf32>
    %189 = vector.extract_strided_slice %4 {offsets = [0, 2], sizes = [8, 1], strides = [1, 1]} : vector<8x3xf32> to vector<8x1xf32>
    %190 = vector.broadcast %189 : vector<8x1xf32> to vector<8x256xf32>
    %191 = arith.addf %188, %190 : vector<8x256xf32>
    %cst_27 = arith.constant 0.000000e+00 : f32
    %192 = vector.broadcast %cst_27 : f32 to vector<8x256xf32>
    %193 = arith.maximumf %191, %192 : vector<8x256xf32>
    %194 = vector.extract_strided_slice %5 {offsets = [0, 0], sizes = [8, 1], strides = [1, 1]} : vector<8x4xf32> to vector<8x1xf32>
    %195 = vector.extract_strided_slice %11 {offsets = [0, 0], sizes = [1, 256], strides = [1, 1]} : vector<4x256xf32> to vector<1x256xf32>
    %196 = vector.broadcast %194 : vector<8x1xf32> to vector<8x256xf32>
    %197 = vector.broadcast %195 : vector<1x256xf32> to vector<8x256xf32>
    %198 = arith.mulf %196, %197 : vector<8x256xf32>
    %199 = vector.extract_strided_slice %5 {offsets = [0, 1], sizes = [8, 1], strides = [1, 1]} : vector<8x4xf32> to vector<8x1xf32>
    %200 = vector.extract_strided_slice %11 {offsets = [1, 0], sizes = [1, 256], strides = [1, 1]} : vector<4x256xf32> to vector<1x256xf32>
    %201 = vector.broadcast %199 : vector<8x1xf32> to vector<8x256xf32>
    %202 = vector.broadcast %200 : vector<1x256xf32> to vector<8x256xf32>
    %203 = arith.mulf %201, %202 : vector<8x256xf32>
    %204 = arith.addf %198, %203 : vector<8x256xf32>
    %205 = vector.extract_strided_slice %5 {offsets = [0, 2], sizes = [8, 1], strides = [1, 1]} : vector<8x4xf32> to vector<8x1xf32>
    %206 = vector.extract_strided_slice %11 {offsets = [2, 0], sizes = [1, 256], strides = [1, 1]} : vector<4x256xf32> to vector<1x256xf32>
    %207 = vector.broadcast %205 : vector<8x1xf32> to vector<8x256xf32>
    %208 = vector.broadcast %206 : vector<1x256xf32> to vector<8x256xf32>
    %209 = arith.mulf %207, %208 : vector<8x256xf32>
    %210 = arith.addf %204, %209 : vector<8x256xf32>
    %211 = vector.extract_strided_slice %5 {offsets = [0, 3], sizes = [8, 1], strides = [1, 1]} : vector<8x4xf32> to vector<8x1xf32>
    %212 = vector.extract_strided_slice %11 {offsets = [3, 0], sizes = [1, 256], strides = [1, 1]} : vector<4x256xf32> to vector<1x256xf32>
    %213 = vector.broadcast %211 : vector<8x1xf32> to vector<8x256xf32>
    %214 = vector.broadcast %212 : vector<1x256xf32> to vector<8x256xf32>
    %215 = arith.mulf %213, %214 : vector<8x256xf32>
    %216 = arith.addf %210, %215 : vector<8x256xf32>
    %217 = arith.addf %193, %216 : vector<8x256xf32>
    %218 = vector.extract_strided_slice %4 {offsets = [0, 0], sizes = [8, 1], strides = [1, 1]} : vector<8x3xf32> to vector<8x1xf32>
    %219 = vector.broadcast %218 : vector<8x1xf32> to vector<8x256xf32>
    %220 = arith.addf %217, %219 : vector<8x256xf32>
    %c0_28 = arith.constant 0 : index
    %c0_29 = arith.constant 0 : index
    %c0_30 = arith.constant 0 : index
    %221 = vector.load %arg9[%c0_28, %c0_29, %c0_30] : memref<1x8x256xf32, #tpu.memory_space<vmem>>, vector<1x8x256xf32>
    %222 = vector.shape_cast %221 : vector<1x8x256xf32> to vector<8x256xf32>
    %223 = vector.shape_cast %220 : vector<8x256xf32> to vector<1x8x256xf32>
    tpu.vector_store %arg9[%c0_28, %c0_29, %c0_30], %223 {strides = array<i32>} : memref<1x8x256xf32, #tpu.memory_space<vmem>>, vector<1x8x256xf32>,
    return
  }
  func.func @transform_0(%arg0: i32) -> (i32, i32, i32) {
    %c0_i32 = arith.constant 0 : i32
    %c0_i32_0 = arith.constant 0 : i32
    %c0_i32_1 = arith.constant 0 : i32
    return %arg0, %c0_i32, %c0_i32_0 : i32, i32, i32
  }
  func.func @transform_1(%arg0: i32) -> (i32, i32) {
    %c0_i32 = arith.constant 0 : i32
    %c0_i32_0 = arith.constant 0 : i32
    %c0_i32_1 = arith.constant 0 : i32
    return %c0_i32, %c0_i32_0 : i32, i32
  }
  func.func @transform_2(%arg0: i32) -> (i32, i32) {
    %c0_i32 = arith.constant 0 : i32
    %c0_i32_0 = arith.constant 0 : i32
    %c0_i32_1 = arith.constant 0 : i32
    return %c0_i32, %c0_i32_0 : i32, i32
  }
  func.func @transform_3(%arg0: i32) -> (i32, i32) {
    %c0_i32 = arith.constant 0 : i32
    %c0_i32_0 = arith.constant 0 : i32
    %c0_i32_1 = arith.constant 0 : i32
    return %c0_i32, %c0_i32_0 : i32, i32
  }
  func.func @transform_4(%arg0: i32) -> (i32, i32) {
    %c0_i32 = arith.constant 0 : i32
    %c0_i32_0 = arith.constant 0 : i32
    %c0_i32_1 = arith.constant 0 : i32
    return %c0_i32, %c0_i32_0 : i32, i32
  }
  func.func @transform_5(%arg0: i32) -> (i32, i32) {
    %c0_i32 = arith.constant 0 : i32
    %c0_i32_0 = arith.constant 0 : i32
    %c0_i32_1 = arith.constant 0 : i32
    return %c0_i32, %c0_i32_0 : i32, i32
  }
  func.func @transform_6(%arg0: i32) -> (i32, i32) {
    %c0_i32 = arith.constant 0 : i32
    %c0_i32_0 = arith.constant 0 : i32
    %c0_i32_1 = arith.constant 0 : i32
    return %c0_i32, %c0_i32_0 : i32, i32
  }
  func.func @transform_7(%arg0: i32) -> (i32, i32) {
    %c0_i32 = arith.constant 0 : i32
    %c0_i32_0 = arith.constant 0 : i32
    %c0_i32_1 = arith.constant 0 : i32
    return %c0_i32, %c0_i32_0 : i32, i32
  }
  func.func @transform_8(%arg0: i32) -> (i32, i32, i32) {
    %c0_i32 = arith.constant 0 : i32
    %c0_i32_0 = arith.constant 0 : i32
    %c0_i32_1 = arith.constant 0 : i32
    return %arg0, %c0_i32, %c0_i32_0 : i32, i32, i32
  }
}

</mosaic_0001>

<bundles_post_ra>
// kernel: tpu_custom_call.1
= control target key start
LH: loop header
LB: loop body
LE: loop exit
PB: predicated region body
PF: predicated region fallthrough
CT: control target
= control target key end

     0   :  { %13 = vsyncpa [#allocation3], 0  ;;  %s1765_s0 = inlined_call_operand.vmem [shape: f32[2,4,256], index: 0, kind: input, shape index: {}]   ;;  %s1766_s1 = inlined_call_operand.vmem [shape: f32[4,256], index: 1, kind: input, shape index: {}]   ;;  %s1767_s2 = inlined_call_operand.vmem [shape: f32[8,4], index: 2, kind: input, shape index: {}]   ;;  %s1768_s3 = inlined_call_operand.vmem [shape: f32[8,4], index: 3, kind: input, shape index: {}]   ;;  %s1769_s4 = inlined_call_operand.hbm [shape: f32[8,8], index: 4, kind: input, shape index: {}]   ;;  %s1770_s5 = inlined_call_operand.vmem [shape: f32[4,9], index: 5, kind: input, shape index: {}]   ;;  %s1771_s6 = inlined_call_operand.hbm [shape: f32[8,9], index: 6, kind: input, shape index: {}]   ;;  %s1772_s7 = inlined_call_operand.vmem [shape: f32[8,3], index: 7, kind: input, shape index: {}]   ;;  %s1773_s8 = inlined_call_operand.hbm [shape: f32[2,8,256], index: 8, kind: output, shape index: {}]  }
   0x1   :  { %14 = vsyncpa [#allocation6], 0 }
   0x2   :  { %15 = vsyncpa [#allocation4], 0 }
   0x3   :  { %17 = vsyncpa [#allocation4 + $0x1], 0  ;;  %s1321_s27 = smov 0   ;;  %s1323_s28 = smov 0  }
   0x4   :  { %s1325_s29 = smov 0   ;;  %s1327_s30 = smov 0  }
   0x5 LB: > { %s1342_s9 = sadd.s32 4294967295, %s1254_s30   ;;  %s987_s10 = sadd.s32 4294967294, %s1254_s30   ;;  %s1254_s30 = sphi %s1327_s30, %s1780_s30   ;;  %s1250_s29 = sphi %s1325_s29, %s1779_s29   ;;  %s1246_s28 = sphi %s1323_s28, %s1778_s28   ;;  %s1242_s27 = sphi %s1321_s27, %s1777_s27  }
   0x6   : > { %s1346_s11 = sadd.s32 1, %s1254_s30   ;;  %s203_s12 = sadd.s32 1, %s1250_s29 }
   0x7   : > { %s200_s13 = ssub.s32 %s1254_s30, %s1346_s11  ;;  %p213_p0 = scmp.ne.s32.totalorder %s1250_s29, %s1246_s28 }
   0x8   : > { %p201_p1 = scmp.eq.s32.totalorder %s200_s13, 0  ;;  %p214_p2 = scmp.eq.s32.totalorder %s1342_s9, 1 }
   0x9   : > { %p219_p3 = scmp.ne.s32.totalorder %s1246_s28, %s1242_s27  ;;  %p220_p4 = scmp.eq.s32.totalorder %s987_s10, 1 }
   0xa   : > { %s1357_s14 = scalar_select %p201_p1, %s1250_s29, %s203_s12  }
   0xb   : > { %p1359_p5 = por %p214_p2, %p213_p0  ;;  %p1363_p6 = por %p220_p4, %p219_p3 }
   0xc   : > { %p988_p7 = scmp.ge.s32.totalorder %s1254_s30, 1  ;;  %p227_p8 = scmp.lt.s32.totalorder %s1254_s30, 3 }
   0xd   : > { %p1029_p9 = scmp.eq.s32.totalorder %s1342_s9, 0  ;;  %s248_s20 = sshll.u32 %s1769_s4, 4  ;;  %s249_s20 = int_to_ptr.hbm [resolvable:$true] %s248_s20 }
   0xe   : > { %p1370_p10 = pnand %p988_p7, %p227_p8  ;;  %s1256_s21 = smov [#allocation2]  }
   0xf   : > { %s250_s22 = sshll.u32 %s1256_s21, 4  ;;  %s263_s25 = sshll.u32 %s1771_s6, 4  ;;  %s251_s22 = int_to_ptr.vmem [resolvable:$true] %s250_s22  ;;  %s264_s25 = int_to_ptr.hbm [resolvable:$true] %s263_s25 }
  0x10   : > { %p1018_p11 = pneg %p1370_p10  ;;  %s1257_s26 = smov [#allocation5]  }
  0x11   : > { %s265_s10 = sshll.u32 %s1257_s26, 4  ;;  %289 = sbr.rel (%p1370_p10) target bundleno = 579 (0x243), region = 52  ;;  %s266_s10 = int_to_ptr.vmem [resolvable:$true] %s265_s10 }
  0x12   : > { %p1019_p12 = pnand %p1029_p9, %p1018_p11 }
  0x14   : > { %1021 = dma.hbm_to_vmem [thread:$0]  (!%p1019_p12), %s249_s20, 128, %s251_s22, [#allocation3]  }
  0x15   : > { %1024 = dma.hbm_to_vmem [thread:$0]  (!%p1019_p12), %s264_s25, 128, %s266_s10, [#allocation6]  }
  0x16   : > { %1229 = dma.done.wait (%p1029_p9), [#allocation3], 128  }
  0x17   : > { %1231 = vsyncadd (%p1029_p9), [#allocation3], 4294967168 }
  0x18   : > { %1233 = dma.done.wait (%p1029_p9), [#allocation6], 128  }
  0x19   : > { %1235 = vsyncadd (%p1029_p9), [#allocation6], 4294967168  ;;  %p329_p13 = scmp.lt.s32.totalorder %s1342_s9, 1  ;;  %v1258_v0 = vmov 3   ;;  %v1259_v1 = vmov 0   ;;  %vm352_vm0 = vcmask 1043456   ;;  %v373_v32 = vlaneseq }
  0x1a   : > { %1086 = vset.pattern.permute.xlu1 %v1258_v0  ;;  %1095 = vset.pattern.permute.xlu2 %v1259_v1  ;;  %v345_v2 = vld [vmem:[%s1770_s5] sm:$0xf]  ;;  %v1260_v10 = vmov 4   ;;  %s1261_s24 = smov 1   ;;  %v1262_v13 = vmov 1   ;;  %v1263_v14 = vmov 2  }
  0x1b   : > { %s330_s12 = scalar_select %p329_p13, %s1342_s9, 1  ;;  %v1407_v3 = vld [vmem:[%s1766_s1] ss:$4 sm:$0x3]  ;;  %380 = vperm.xlu1 %1086, %v345_v2   ;;  %v1264_v15 = vmov 6   ;;  %v1265_v16 = vmov 7  }
  0x1c   : > { %v349_v4 = vperm.slane %v1407_v3, 0  ;;  %v350_v5 = vperm.slane %v1407_v3, 1  ;;  %v1266_v17 = vmov 8   ;;  %v343_v18 = vld [vmem:[%s1768_s3] sm:$0xff]  ;;  %v1267_v19 = vmov 5   ;;  %s1269_s18 = smov 127  }
  0x1d   : > { %s1006_s13 = sshll.u32 %s330_s12, 3  ;;  %560 = vperm.xlu2 %1095, %v343_v18   ;;  %1088 = vset.pattern.permute.xlu0 %v1267_v19  ;;  %v1442_v20 = vld [vmem:[%s1772_s7] sm:$0xff]  ;;  %v1268_v22 = vmov 839922192   ;;  %v1461_v35 = vand.u32 127, %v373_v32  ;;  %s1270_s19 = smov 17  }
  0x1e   : > { %s333_s21 = scalar_lea.vmem %s1765_s0, %s1006_s13  ;;  %v351_v7 = vrot.slane %v350_v5, 4  ;;  %v389_v23 = vunpack.c.l.s4 %v1268_v22  ;;  %v1450_v24 = vld [vmem:[%s1766_s1 + $0x1] ss:$4 sm:$0x3]  ;;  %v1478_v50 = vld [vmem:[#allocation5] sm:$0xff]  ;;  %s1271_s20 = smov 16  }
  0x1f   : > { %v1411_v6 = vld [vmem:[%s333_s21] sm:$0xff]  ;;  %v358_v26 = vperm.slane %v1450_v24, 1  ;;  %v357_v29 = vperm.slane %v1450_v24, 0  ;;  %vm375_vm1 = vcmp.lt.s32.totalorder %v1461_v35, 1  ;;  %s1272_s21 = smov 15   ;;  %s1273_s22 = smov 113  }
  0x20   : > { %v353_v8 = vsel %vm352_vm0, %v349_v4, %v351_v7  ;;  %v390_v25 = vunpack.c.0.s8 %v389_v23  ;;  %s1274_s23 = smov 112   ;;  %s1275_s25 = smov 111   ;;  %vm412_vm2 = vcmp.lt.s32.totalorder %v1461_v35, 127  ;;  %vm451_vm3 = vcmp.lt.s32.totalorder %v1461_v35, 16  ;;  %v342_v3 = vld [vmem:[%s1767_s2] sm:$0xff] }
  0x21   : > { %v1419_v9 = vmul.f32 %v353_v8, %v1411_v6  ;;  %v359_v30 = vrot.slane %v358_v26, 4  ;;  %vm432_vm4 = vcmp.lt.s32.totalorder %v1461_v35, 17  ;;  %vm471_vm5 = vcmp.lt.s32.totalorder %v1461_v35, 15 }
  0x22   : > { %vm518_vm6 = vcmp.lt.s32.totalorder %v1461_v35, 112  ;;  %vm500_vm7 = vcmp.lt.s32.totalorder %v1461_v35, 113  ;;  %vm538_vm8 = vcmp.lt.s32.totalorder %v1461_v35, 111 }
  0x23   : > { %364 = vst [vmem:[#allocation1] ss:$2 sm:$0xff] %v1419_v9  ;;  %1087 = vset.pattern.permute.xlu1 %v1260_v10  ;;  %v360_v33 = vsel %vm352_vm0, %v357_v29, %v359_v30 }
  0x24   : > { %386 = vperm.xlu1 %1087, %v345_v2   ;;  %v362_v36 = vmul.f32 %v360_v33, %v1411_v6 }
  0x25   : > { %1098 = vset.pattern.permute.xlu2 %v1258_v0 }
  0x26   : > { %588 = vperm.xlu2 %1098, %v343_v18  }
  0x2a   : > { %v365_v11 = vld.sshfl [vmem:[#allocation1] sm:$0xff pattern:$0x75316420]  ;;  %v366_v12 = vld.sshfl [vmem:[#allocation1 + $0x8] sm:$0xff pattern:$0x75316420] }
  0x2b   : > { %369 = vrot.lane.b32.xlu0 %v365_v11, %s1261_s24 }
  0x2c   : > { %1089 = vset.pattern.permute.xlu1 %v1259_v1 }
  0x2d   : > { %436 = vperm.xlu1 %1089, %v345_v2  }
  0x2e   : > { %1101 = vset.pattern.permute.xlu2 %v1260_v10 }
  0x33   : > { %371 = vrot.lane.b32.xlu0 %v366_v12, %s1261_s24 }
  0x35   : > { %1090 = vset.pattern.permute.xlu1 %v1262_v13 }
  0x36   : > { %455 = vperm.xlu1 %1090, %v345_v2  }
  0x3b   : > { %416 = vperm.xlu0 %1088, %v345_v2  }
  0x3e   : > { %1091 = vset.pattern.permute.xlu1 %v1263_v14 }
  0x3f   : > { %475 = vperm.xlu1 %1091, %v345_v2  }
  0x43   : > { %1096 = vset.pattern.permute.xlu0 %v1262_v13 }
  0x44   : > { %568 = vperm.xlu0 %1096, %v343_v18  }
  0x47   : > { %1092 = vset.pattern.permute.xlu1 %v1264_v15 }
  0x48   : > { %504 = vperm.xlu1 %1092, %v345_v2  }
  0x4c   : > { %1109 = vset.pattern.permute.xlu0 %v1259_v1 }
  0x50   : > { %1093 = vset.pattern.permute.xlu1 %v1265_v16 }
  0x51   : > { %522 = vperm.xlu1 %1093, %v345_v2  }
  0x59   : > { %1094 = vset.pattern.permute.xlu1 %v1266_v17 }
  0x5a   : > { %542 = vperm.xlu1 %1094, %v345_v2  }
  0x62   : > { %1097 = vset.pattern.permute.xlu1 %v1263_v14 }
  0x63   : > { %578 = vperm.xlu1 %1097, %v343_v18  }
  0x6b   : > { %1099 = vset.pattern.permute.xlu1 %v1262_v13 }
  0x6c   : > { %599 = vperm.xlu1 %1099, %v1442_v20  }
  0x74   : > { %1100 = vset.pattern.permute.xlu1 %v1258_v0 }
  0x77   : > { %v1498_v62 = vpop.permute.xlu2 %560 }
  0x80   : > { %v1501_v7 = vpop.permute.xlu2 %588 }
  0x8d   : > { %v381_v21 = vpop.permute.xlu1 %380 }
  0x96   : > { %v387_v27 = vpop.permute.xlu1 %386 }
  0x97   : > { %v391_v28 = vperm.slane %v387_v27, %v390_v25 }
  0x99   : > { %v393_v31 = vmul.f32 %v391_v28, %v1411_v6 }
  0x9b   : > { %395 = vst [vmem:[#allocation1] ss:$2 sm:$0xff] %v393_v31 }
  0x9d   : > { %v370_v34 = vpop.permute.xlu0 %369 }
  0x9f   : > { %v437_v60 = vpop.permute.xlu1 %436 }
  0xa2   : > { %v396_v37 = vld.sshfl [vmem:[#allocation1] sm:$0xff pattern:$0x75316420]  ;;  %v397_v38 = vld.sshfl [vmem:[#allocation1 + $0x8] sm:$0xff pattern:$0x75316420] }
  0xa3   : > { %403 = vst [vmem:[#allocation1] ss:$2 sm:$0xff] %v362_v36 }
  0xa5   : > { %v372_v39 = vpop.permute.xlu0 %371 }
  0xa6   : > { %v376_v40 = vsel %vm375_vm1, %v370_v34, %v372_v39  ;;  %v377_v41 = vsel %vm375_vm1, %v372_v39, %v370_v34 }
  0xa7   : > { %v383_v42 = vmul.f32 %v381_v21, %v377_v41  ;;  %v384_v43 = vmul.f32 %v381_v21, %v376_v40 }
  0xa8   : > { %v456_v61 = vpop.permute.xlu1 %455 }
  0xa9   : > { %v1469_v44 = vadd.f32 %v396_v37, %v383_v42  ;;  %v1471_v45 = vadd.f32 %v397_v38, %v384_v43 }
  0xaa   : > { %v404_v46 = vld.sshfl [vmem:[#allocation1] sm:$0xff pattern:$0x75316420]  ;;  %v405_v47 = vld.sshfl [vmem:[#allocation1 + $0x8] sm:$0xff pattern:$0x75316420] }
  0xab   : > { %408 = vrot.lane.b32.xlu2 %v404_v46, %s1269_s18  ;;  %423 = vst [vmem:[#allocation1] ss:$2 sm:$0xff] %v1419_v9  ;;  %v1551_v46 = vld [vmem:[%s1766_s1 + $0x3] ss:$4 sm:$0x3] }
  0xad   : > { %v417_v12 = vpop.permute.xlu0 %416 }
  0xb1   : > { %v476_v2 = vpop.permute.xlu1 %475 }
  0xb2   : > { %v425_v48 = vld.sshfl [vmem:[#allocation1 + $0x8] sm:$0xff pattern:$0x75316420]  ;;  %v424_v49 = vld.sshfl [vmem:[#allocation1] sm:$0xff pattern:$0x75316420] }
  0xb3   : > { %410 = vrot.lane.b32.xlu2 %v405_v47, %s1269_s18  ;;  %428 = vrot.lane.b32.xlu1 %v424_v49, %s1270_s19  ;;  %442 = vst [vmem:[#allocation1] ss:$2 sm:$0xff] %v1411_v6 }
  0xb6   : > { %v1531_v34 = vpop.permute.xlu0 %568 }
  0xba   : > { %v444_v51 = vld.sshfl [vmem:[#allocation1 + $0x8] sm:$0xff pattern:$0x75316420]  ;;  %v443_v52 = vld.sshfl [vmem:[#allocation1] sm:$0xff pattern:$0x75316420]  ;;  %v1504_v8 = vpop.permute.xlu1 %504 }
  0xbb   : > { %628 = vperm.xlu2 %1101, %v1478_v50   ;;  %449 = vrot.lane.b32.xlu0 %v444_v51, %s1271_s20  ;;  %462 = vst [vmem:[#allocation1] ss:$2 sm:$0xff] %v362_v36  ;;  %v483_v51 = vperm.slane %v1551_v46, 0 }
  0xbc   : > { %622 = vperm.xlu1 %1100, %v1478_v50  }
  0xc2   : > { %v464_v53 = vld.sshfl [vmem:[#allocation1 + $0x8] sm:$0xff pattern:$0x75316420]  ;;  %v463_v54 = vld.sshfl [vmem:[#allocation1] sm:$0xff pattern:$0x75316420] }
  0xc3   : > { %1102 = vset.pattern.permute.xlu2 %v1267_v19  ;;  %469 = vrot.lane.b32.xlu0 %v464_v53, %s1272_s21  ;;  %491 = vst [vmem:[#allocation1] ss:$2 sm:$0xff] %v1419_v9  ;;  %v1508_v11 = vpop.permute.xlu1 %522 }
  0xc4   : > { %642 = vperm.xlu2 %1102, %v1478_v50   ;;  %1110 = vset.pattern.permute.xlu1 %v1262_v13 }
  0xca   : > { %v492_v55 = vld.sshfl [vmem:[#allocation1] sm:$0xff pattern:$0x75316420]  ;;  %v493_v56 = vld.sshfl [vmem:[#allocation1 + $0x8] sm:$0xff pattern:$0x75316420] }
  0xcb   : > { %498 = vrot.lane.b32.xlu0 %v493_v56, %s1273_s22  ;;  %509 = vst [vmem:[#allocation1] ss:$2 sm:$0xff] %v1411_v6 }
  0xcc   : > { %430 = vrot.lane.b32.xlu2 %v425_v48, %s1270_s19  ;;  %v1519_v30 = vpop.permute.xlu1 %542 }
  0xcd   : > { %1103 = vset.pattern.permute.xlu2 %v1259_v1 }
  0xd2   : > { %v510_v57 = vld.sshfl [vmem:[#allocation1] sm:$0xff pattern:$0x75316420]  ;;  %v511_v58 = vld.sshfl [vmem:[#allocation1 + $0x8] sm:$0xff pattern:$0x75316420] }
  0xd3   : > { %516 = vrot.lane.b32.xlu0 %v511_v58, %s1274_s23  ;;  %529 = vst [vmem:[#allocation1] ss:$2 sm:$0xff] %v362_v36 }
  0xd4   : > { %447 = vrot.lane.b32.xlu2 %v443_v52, %s1271_s20  ;;  %v484_v52 = vperm.slane %v1551_v46, 1 }
  0xd5   : > { %v1525_v32 = vpop.permute.xlu1 %578 }
  0xda   : > { %v531_v59 = vld.sshfl [vmem:[#allocation1 + $0x8] sm:$0xff pattern:$0x75316420]  ;;  %v530_v63 = vld.sshfl [vmem:[#allocation1] sm:$0xff pattern:$0x75316420] }
  0xdb   : > { %536 = vrot.lane.b32.xlu0 %v531_v59, %s1275_s25 }
  0xdc   : > { %467 = vrot.lane.b32.xlu2 %v463_v54, %s1272_s21 }
  0xde   : > { %v1533_v36 = vpop.permute.xlu1 %599 }
  0xe4   : > { %496 = vrot.lane.b32.xlu2 %v492_v55, %s1273_s22 }
  0xec   : > { %514 = vrot.lane.b32.xlu2 %v510_v57, %s1274_s23 }
  0xf4   : > { %534 = vrot.lane.b32.xlu2 %v530_v63, %s1275_s25 }
  0xfc   : > { %656 = vperm.xlu2 %1103, %v1478_v50  }
 0x104   : > { %1104 = vset.pattern.permute.xlu2 %v1262_v13 }
 0x105   : > { %v409_v9 = vpop.permute.xlu2 %408  ;;  %668 = vperm.xlu2 %1104, %v1478_v50  }
 0x10d   : > { %v411_v18 = vpop.permute.xlu2 %410  ;;  %1105 = vset.pattern.permute.xlu2 %v1263_v14 }
 0x10e   : > { %v413_v21 = vsel %vm412_vm2, %v409_v9, %v411_v18  ;;  %v414_v22 = vsel %vm412_vm2, %v411_v18, %v409_v9  ;;  %682 = vperm.xlu2 %1105, %v1478_v50  }
 0x10f   : > { %v419_v23 = vmul.f32 %v417_v12, %v413_v21  ;;  %v420_v25 = vmul.f32 %v417_v12, %v414_v22 }
 0x111   : > { %v421_v27 = vadd.f32 %v419_v23, %v1469_v44  ;;  %v422_v28 = vadd.f32 %v420_v25, %v1471_v45 }
 0x115   : > { %v1521_v31 = vpop.permute.xlu2 %628 }
 0x116   : > { %1106 = vset.pattern.permute.xlu2 %v1264_v15 }
 0x117   : > { %700 = vperm.xlu2 %1106, %v1478_v50  }
 0x11e   : > { %v1527_v33 = vpop.permute.xlu2 %642 }
 0x11f   : > { %1107 = vset.pattern.permute.xlu2 %v1265_v16 }
 0x120   : > { %712 = vperm.xlu2 %1107, %v1478_v50  }
 0x125   : > { %v429_v40 = vpop.permute.xlu1 %428 }
 0x126   : > { %v431_v37 = vpop.permute.xlu2 %430 }
 0x127   : > { %v434_v43 = vsel %vm432_vm4, %v431_v37, %v429_v40 }
 0x128   : > { %1108 = vset.pattern.permute.xlu2 %v1266_v17  ;;  %v433_v17 = vsel %vm432_vm4, %v429_v40, %v431_v37  ;;  %v439_v48 = vmul.f32 %v437_v60, %v434_v43 }
 0x129   : > { %726 = vperm.xlu2 %1108, %v1478_v50   ;;  %v440_v49 = vmul.f32 %v437_v60, %v433_v17 }
 0x12d   : > { %v450_v38 = vpop.permute.xlu0 %449 }
 0x12e   : > { %v448_v39 = vpop.permute.xlu2 %447 }
 0x12f   : > { %v452_v41 = vsel %vm451_vm3, %v448_v39, %v450_v38  ;;  %v453_v42 = vsel %vm451_vm3, %v450_v38, %v448_v39  ;;  %v1579_v39 = vld [vmem:[%s1766_s1 + $0x2] ss:$4 sm:$0x3] }
 0x130   : > { %v458_v44 = vmul.f32 %v456_v61, %v453_v42  ;;  %v459_v45 = vmul.f32 %v456_v61, %v452_v41  ;;  %v550_v43 = vperm.slane %v1579_v39, 0 }
 0x131   : > { %1111 = vset.pattern.permute.xlu2 %v1263_v14 }
 0x132   : > { %v460_v55 = vadd.f32 %v458_v44, %v439_v48  ;;  %v461_v56 = vadd.f32 %v459_v45, %v440_v49  ;;  %v551_v44 = vperm.slane %v1579_v39, 1 }
 0x135   : > { %v470_v47 = vpop.permute.xlu0 %469 }
 0x136   : > { %v468_v50 = vpop.permute.xlu2 %467 }
 0x137   : > { %v472_v53 = vsel %vm471_vm5, %v468_v50, %v470_v47  ;;  %v473_v54 = vsel %vm471_vm5, %v470_v47, %v468_v50 }
 0x138   : > { %v478_v57 = vmul.f32 %v476_v2, %v473_v54  ;;  %v479_v58 = vmul.f32 %v476_v2, %v472_v53 }
 0x13a   : > { %v480_v59 = vadd.f32 %v478_v57, %v460_v55  ;;  %v481_v61 = vadd.f32 %v479_v58, %v461_v56 }
 0x13c   : > { %v487_v60 = vmul.f32 %v483_v51, %v480_v59  ;;  %v488_v63 = vmul.f32 %v484_v52, %v481_v61 }
 0x13d   : > { %v499_v9 = vpop.permute.xlu0 %498 }
 0x13e   : > { %v489_v12 = vadd.f32 %v487_v60, %v421_v27  ;;  %v490_v18 = vadd.f32 %v488_v63, %v422_v28  ;;  %v497_v21 = vpop.permute.xlu2 %496 }
 0x13f   : > { %v501_v37 = vsel %vm500_vm7, %v497_v21, %v499_v9  ;;  %v502_v27 = vsel %vm500_vm7, %v499_v9, %v497_v21 }
 0x140   : > { %v507_v41 = vmul.f32 %v1504_v8, %v501_v37  ;;  %v508_v42 = vmul.f32 %v1504_v8, %v502_v27 }
 0x145   : > { %v517_v22 = vpop.permute.xlu0 %516 }
 0x146   : > { %v515_v23 = vpop.permute.xlu2 %514 }
 0x147   : > { %v519_v2 = vsel %vm518_vm6, %v515_v23, %v517_v22  ;;  %v520_v25 = vsel %vm518_vm6, %v517_v22, %v515_v23 }
 0x148   : > { %v525_v28 = vmul.f32 %v1508_v11, %v519_v2  ;;  %v526_v38 = vmul.f32 %v1508_v11, %v520_v25 }
 0x14a   : > { %v527_v47 = vadd.f32 %v525_v28, %v507_v41  ;;  %v528_v48 = vadd.f32 %v526_v38, %v508_v42 }
 0x14d   : > { %v537_v40 = vpop.permute.xlu0 %536 }
 0x14e   : > { %v535_v17 = vpop.permute.xlu2 %534 }
 0x14f   : > { %v539_v11 = vsel %vm538_vm8, %v535_v17, %v537_v40  ;;  %v540_v45 = vsel %vm538_vm8, %v537_v40, %v535_v17 }
 0x150   : > { %v545_v49 = vmul.f32 %v1519_v30, %v539_v11  ;;  %v546_v50 = vmul.f32 %v1519_v30, %v540_v45 }
 0x152   : > { %v547_v53 = vadd.f32 %v545_v49, %v527_v47  ;;  %v548_v54 = vadd.f32 %v546_v50, %v528_v48 }
 0x154   : > { %v554_v8 = vmul.f32 %v550_v43, %v547_v53  ;;  %v555_v55 = vmul.f32 %v551_v44, %v548_v54 }
 0x156   : > { %v556_v56 = vadd.f32 %v554_v8, %v489_v12  ;;  %v557_v57 = vadd.f32 %v555_v55, %v490_v18 }
 0x158   : > { %v563_v58 = vperm.slane %v556_v56, 0  ;;  %v564_v59 = vperm.slane %v557_v57, 0  ;;  %v571_v61 = vperm.slane %v556_v56, 1  ;;  %v572_v60 = vperm.slane %v557_v57, 1 }
 0x159   : > { %v581_v63 = vperm.slane %v556_v56, 2  ;;  %v582_v9 = vperm.slane %v557_v57, 2  ;;  %v591_v21 = vperm.slane %v556_v56, 3  ;;  %v592_v22 = vperm.slane %v557_v57, 3 }
 0x15a   : > { %v565_v30 = vmul.f32 %v563_v58, %v1498_v62  ;;  %v566_v23 = vmul.f32 %v564_v59, %v1498_v62  ;;  %v573_v2 = vmul.f32 %v571_v61, %v1531_v34  ;;  %v574_v25 = vmul.f32 %v572_v60, %v1531_v34 }
 0x15b   : > { %v584_v12 = vmul.f32 %v582_v9, %v1525_v32  ;;  %v583_v27 = vmul.f32 %v581_v63, %v1525_v32  ;;  %v594_v38 = vmul.f32 %v592_v22, %v1501_v7  ;;  %v593_v41 = vmul.f32 %v591_v21, %v1501_v7  ;;  %v344_v32 = vld [vmem:[#allocation2] sm:$0xff] }
 0x15c   : > { %v576_v37 = vadd.f32 %v574_v25, %v566_v23  ;;  %v575_v18 = vadd.f32 %v573_v2, %v565_v30 }
 0x15e   : > { %v586_v28 = vadd.f32 %v584_v12, %v576_v37  ;;  %v585_v40 = vadd.f32 %v583_v27, %v575_v18 }
 0x160   : > { %v596_v42 = vadd.f32 %v594_v38, %v586_v28  ;;  %v595_v17 = vadd.f32 %v593_v41, %v585_v40 }
 0x162   : > { %v603_v62 = vadd.f32 %v1533_v36, %v596_v42  ;;  %v602_v11 = vadd.f32 %v1533_v36, %v595_v17 }
 0x164   : > { %v1606_v45 = vmax.f32 %v603_v62, 0.0  ;;  %v1608_v34 = vmax.f32 %v602_v11, 0.0 }
 0x166   : > { %663 = vrot.lane.b32.xlu1 %v1606_v45, %s1271_s20  ;;  %661 = vrot.lane.b32.xlu0 %v1608_v34, %s1271_s20  ;;  %v608_v7 = vmul.f32 %v1608_v34, %v349_v4  ;;  %v613_v36 = vmul.f32 %v1606_v45, %v358_v26  ;;  %v609_v47 = vmul.f32 %v1606_v45, %v350_v5  ;;  %v657_v5 = vpop.permute.xlu2 %656  ;;  %s1007_s20 = sshll.u32 %s1342_s9, 4 }
 0x167   : > { %v612_v4 = vmul.f32 %v1608_v34, %v357_v29  ;;  %v631_v55 = vmul.f32 %v1521_v31, %v1608_v34 }
 0x168   : > { %614 = vrot.lane.b32.xlu2 %v608_v7, %s1261_s24 }
 0x16e   : > { %707 = vrot.lane.b32.xlu1 %v1606_v45, %s1274_s23  ;;  %705 = vrot.lane.b32.xlu0 %v1608_v34, %s1274_s23  ;;  %s901_s23 = scalar_lea.hbm %s1773_s8, %s1007_s20 }
 0x16f   : > { %s905_s10 = sshll.u32 %s901_s23, 4  ;;  %s906_s10 = int_to_ptr.hbm [resolvable:$true] %s905_s10 }
 0x170   : > { %757 = vperm.xlu2 %1111, %v344_v32   ;;  %s1198_s12 = sshra.s32 %s906_s10, 4  ;;  %s1199_s12 = int_to_ptr.hbm [resolvable:$true] %s1198_s12 }
 0x171   : > { %s1200_s13 = scalar_lea.hbm %s1199_s12, 16  ;;  %p1205_p3 = scmp.lt.s32.totalorder %s1199_s12, %s1773_s8 }
 0x172   : > { %p1201_p0 = scmp.ne.s32.totalorder %s1199_s12, %s1200_s13 }
 0x174   : > { %p1202_p1 = pnand %p1201_p0, %p1359_p5 }
 0x176   : > { %637 = vrot.lane.b32.xlu1 %v613_v36, %s1269_s18  ;;  %616 = vrot.lane.b32.xlu0 %v609_v47, %s1261_s24  ;;  %p1203_p2 = pneg %p1202_p1 }
 0x178   : > { %1113 = vset.pattern.permute.xlu2 %v1260_v10  ;;  %v669_v10 = vpop.permute.xlu2 %668 }
 0x179   : > { %777 = vperm.xlu2 %1113, %v344_v32  }
 0x17e   : > { %651 = vrot.lane.b32.xlu1 %v609_v47, %s1270_s19  ;;  %635 = vrot.lane.b32.xlu0 %v612_v4, %s1269_s18  ;;  %s326_s18 = sand.u32 1, %s1246_s28  }
 0x17f   : > { %s890_s9 = scalar_lea.sflag [#allocation4], %s326_s18 }
 0x181   : > { %1116 = vset.pattern.permute.xlu2 %v1265_v16 }
 0x182   : > { %807 = vperm.xlu2 %1116, %v344_v32  }
 0x186   : > { %677 = vrot.lane.b32.xlu1 %v613_v36, %s1272_s21  ;;  %649 = vrot.lane.b32.xlu0 %v608_v7, %s1270_s19  ;;  %s995_s19 = sshll.u32 %s326_s18, 4 }
 0x18a   : > { %1118 = vset.pattern.permute.xlu2 %v1262_v13  ;;  %v683_v13 = vpop.permute.xlu2 %682 }
 0x18b   : > { %838 = vperm.xlu2 %1118, %v342_v3  }
 0x18e   : > { %695 = vrot.lane.b32.xlu1 %v609_v47, %s1273_s22  ;;  %675 = vrot.lane.b32.xlu0 %v612_v4, %s1272_s21 }
 0x193   : > { %1121 = vset.pattern.permute.xlu2 %v1258_v0 }
 0x194   : > { %866 = vperm.xlu2 %1121, %v342_v3  }
 0x196   : > { %747 = vperm.xlu1 %1110, %v344_v32   ;;  %693 = vrot.lane.b32.xlu0 %v608_v7, %s1273_s22 }
 0x19e   : > { %721 = vrot.lane.b32.xlu1 %v613_v36, %s1275_s25  ;;  %719 = vrot.lane.b32.xlu0 %v612_v4, %s1275_s25  ;;  %s328_s25 = scalar_lea.vmem [#allocation7], %s995_s19  ;;  %s1204_s19 = scalar_lea.hbm %s1773_s8, 32 }
 0x19f   : > { %1112 = vset.pattern.permute.xlu1 %v1258_v0  ;;  %v701_v0 = vpop.permute.xlu2 %700  ;;  %s903_s26 = sshll.u32 %s328_s25, 4  ;;  %p1206_p4 = scmp.lt.s32.totalorder %s1204_s19, %s1200_s13  ;;  %s904_s26 = int_to_ptr.vmem [resolvable:$true] %s903_s26 }
 0x1a1   : > { %p1207_p7 = por %p1206_p4, %p1205_p3 }
 0x1a3   : > { %p1208_p8 = pnand %p1207_p7, %p1203_p2 }
 0x1a6   : > { %767 = vperm.xlu1 %1112, %v344_v32   ;;  %739 = vperm.xlu0 %1109, %v344_v32  }
 0x1a7   : > { %v713_v16 = vpop.permute.xlu2 %712 }
 0x1ae   : > { %1115 = vset.pattern.permute.xlu1 %v1264_v15  ;;  %1114 = vset.pattern.permute.xlu0 %v1267_v19  ;;  %v623_v15 = vpop.permute.xlu1 %622 }
 0x1af   : > { %797 = vperm.xlu1 %1115, %v344_v32   ;;  %787 = vperm.xlu0 %1114, %v344_v32   ;;  %v727_v26 = vpop.permute.xlu2 %726 }
 0x1b7   : > { %1117 = vset.pattern.permute.xlu1 %v1259_v1  ;;  %1119 = vset.pattern.permute.xlu0 %v1263_v14 }
 0x1b8   : > { %826 = vperm.xlu1 %1117, %v342_v3   ;;  %852 = vperm.xlu0 %1119, %v342_v3  }
 0x1c0   : > { %1120 = vset.pattern.permute.xlu1 %v1263_v14  ;;  %1123 = vset.pattern.permute.xlu0 %v1259_v1 }
 0x1c1   : > { %817 = vperm.xlu1 %1120, %v1442_v20  }
 0x1c2   : > { %v615_v49 = vpop.permute.xlu2 %614 }
 0x1c9   : > { %1122 = vset.pattern.permute.xlu1 %v1259_v1  ;;  %v632_v1 = vmul.f32 %v1521_v31, %v1606_v45 }
 0x1ca   : > { %882 = vperm.xlu1 %1122, %v1442_v20   ;;  %v758_v34 = vpop.permute.xlu2 %757 }
 0x1d8   : > { %v664_v19 = vpop.permute.xlu1 %663  ;;  %v662_v24 = vpop.permute.xlu0 %661 }
 0x1d9   : > { %v665_v30 = vsel %vm451_vm3, %v662_v24, %v664_v19  ;;  %v666_v31 = vsel %vm451_vm3, %v664_v19, %v662_v24 }
 0x1da   : > { %v671_v27 = vmul.f32 %v669_v10, %v666_v31  ;;  %v672_v28 = vmul.f32 %v669_v10, %v665_v30 }
 0x1e0   : > { %v708_v29 = vpop.permute.xlu1 %707  ;;  %v706_v48 = vpop.permute.xlu0 %705 }
 0x1e1   : > { %v709_v11 = vsel %vm518_vm6, %v706_v48, %v708_v29  ;;  %v710_v45 = vsel %vm518_vm6, %v708_v29, %v706_v48 }
 0x1e2   : > { %v716_v10 = vmul.f32 %v713_v16, %v710_v45 }
 0x1e8   : > { %v638_v50 = vpop.permute.xlu1 %637  ;;  %v617_v53 = vpop.permute.xlu0 %616 }
 0x1e9   : > { %v618_v14 = vsel %vm375_vm1, %v615_v49, %v617_v53  ;;  %v619_v54 = vsel %vm375_vm1, %v617_v53, %v615_v49 }
 0x1ea   : > { %v625_v20 = vmul.f32 %v623_v15, %v619_v54  ;;  %v626_v8 = vmul.f32 %v623_v15, %v618_v14 }
 0x1ec   : > { %v633_v56 = vadd.f32 %v631_v55, %v625_v20  ;;  %v634_v57 = vadd.f32 %v632_v1, %v626_v8 }
 0x1f0   : > { %v652_v58 = vpop.permute.xlu1 %651  ;;  %v636_v59 = vpop.permute.xlu0 %635 }
 0x1f1   : > { %v639_v7 = vsel %vm412_vm2, %v636_v59, %v638_v50  ;;  %v640_v32 = vsel %vm412_vm2, %v638_v50, %v636_v59 }
 0x1f2   : > { %v646_v15 = vmul.f32 %v1527_v33, %v640_v32 }
 0x1f8   : > { %v678_v61 = vpop.permute.xlu1 %677  ;;  %v650_v60 = vpop.permute.xlu0 %649 }
 0x1f9   : > { %v653_v21 = vsel %vm432_vm4, %v650_v60, %v652_v58  ;;  %v654_v22 = vsel %vm432_vm4, %v652_v58, %v650_v60 }
 0x1fa   : > { %v659_v25 = vmul.f32 %v657_v5, %v654_v22  ;;  %v660_v37 = vmul.f32 %v657_v5, %v653_v21  ;;  %v715_v5 = vmul.f32 %v713_v16, %v709_v11 }
 0x1fc   : > { %v673_v41 = vadd.f32 %v671_v27, %v659_v25  ;;  %v674_v42 = vadd.f32 %v672_v28, %v660_v37 }
 0x200   : > { %v696_v63 = vpop.permute.xlu1 %695  ;;  %v676_v9 = vpop.permute.xlu0 %675 }
 0x201   : > { %v679_v23 = vsel %vm471_vm5, %v676_v9, %v678_v61  ;;  %v680_v2 = vsel %vm471_vm5, %v678_v61, %v676_v9 }
 0x202   : > { %v685_v38 = vmul.f32 %v683_v13, %v680_v2  ;;  %v686_v40 = vmul.f32 %v683_v13, %v679_v23  ;;  %v645_v13 = vmul.f32 %v1527_v33, %v639_v7  ;;  %v648_v33 = vadd.f32 %v646_v15, %v634_v57 }
 0x204   : > { %v687_v36 = vadd.f32 %v685_v38, %v673_v41  ;;  %v688_v47 = vadd.f32 %v686_v40, %v674_v42  ;;  %v647_v54 = vadd.f32 %v645_v13, %v633_v56  ;;  %v841_v42 = vperm.slane %v1411_v6, 1 }
 0x206   : > { %v689_v29 = vmul.f32 %v687_v36, %v483_v51  ;;  %v690_v48 = vmul.f32 %v688_v47, %v484_v52  ;;  %v778_v52 = vpop.permute.xlu2 %777  ;;  %v829_v36 = vperm.slane %v1411_v6, 0  ;;  %v830_v47 = vperm.slane %v1411_v6, 4 }
 0x208   : > { %v748_v12 = vpop.permute.xlu1 %747  ;;  %v694_v18 = vpop.permute.xlu0 %693  ;;  %v691_v8 = vadd.f32 %v689_v29, %v647_v54  ;;  %v692_v55 = vadd.f32 %v690_v48, %v648_v33  ;;  %v833_v29 = vperm.slane %v829_v36, 0  ;;  %v834_v48 = vperm.slane %v830_v47, 0 }
 0x209   : > { %v697_v17 = vsel %vm500_vm7, %v694_v18, %v696_v63  ;;  %v698_v62 = vsel %vm500_vm7, %v696_v63, %v694_v18 }
 0x20a   : > { %v703_v4 = vmul.f32 %v701_v0, %v697_v17  ;;  %v704_v3 = vmul.f32 %v701_v0, %v698_v62  ;;  %v842_v17 = vperm.slane %v1411_v6, 5 }
 0x20c   : > { %v717_v50 = vadd.f32 %v715_v5, %v703_v4  ;;  %v718_v16 = vadd.f32 %v716_v10, %v704_v3  ;;  %v845_v10 = vperm.slane %v841_v42, 1  ;;  %v846_v13 = vperm.slane %v842_v17, 1 }
 0x20e   : > { %v808_v27 = vpop.permute.xlu2 %807 }
 0x210   : > { %v722_v19 = vpop.permute.xlu1 %721  ;;  %v720_v24 = vpop.permute.xlu0 %719 }
 0x211   : > { %v723_v49 = vsel %vm538_vm8, %v720_v24, %v722_v19  ;;  %v724_v0 = vsel %vm538_vm8, %v722_v19, %v720_v24 }
 0x212   : > { %v729_v53 = vmul.f32 %v727_v26, %v723_v49  ;;  %v730_v14 = vmul.f32 %v727_v26, %v724_v0  ;;  %v855_v49 = vperm.slane %v1411_v6, 2  ;;  %v856_v0 = vperm.slane %v1411_v6, 6 }
 0x214   : > { %v731_v1 = vadd.f32 %v729_v53, %v717_v50  ;;  %v732_v20 = vadd.f32 %v730_v14, %v718_v16 }
 0x216   : > { %v733_v46 = vmul.f32 %v731_v1, %v550_v43  ;;  %v734_v51 = vmul.f32 %v732_v20, %v551_v44  ;;  %v839_v24 = vpop.permute.xlu2 %838  ;;  %v869_v20 = vperm.slane %v1411_v6, 3 }
 0x217   : > { %v847_v33 = vmul.f32 %v845_v10, %v839_v24  ;;  %v848_v1 = vmul.f32 %v846_v13, %v839_v24 }
 0x218   : > { %v1705_v58 = vadd.f32 %v733_v46, %v691_v8  ;;  %v1707_v35 = vadd.f32 %v734_v51, %v692_v55  ;;  %v768_v59 = vpop.permute.xlu1 %767  ;;  %v740_v61 = vpop.permute.xlu0 %739  ;;  %v870_v8 = vperm.slane %v1411_v6, 7 }
 0x21a   : > { %v742_v26 = vperm.slane %v1705_v58, 0  ;;  %v743_v56 = vperm.slane %v1707_v35, 0  ;;  %v750_v57 = vperm.slane %v1705_v58, 1  ;;  %v751_v60 = vperm.slane %v1707_v35, 1 }
 0x21b   : > { %v770_v44 = vperm.slane %v1705_v58, 3  ;;  %v771_v21 = vperm.slane %v1707_v35, 3  ;;  %v760_v22 = vperm.slane %v1705_v58, 2  ;;  %v761_v30 = vperm.slane %v1707_v35, 2 }
 0x21c   : > { %v744_v63 = vmul.f32 %v742_v26, %v740_v61  ;;  %v745_v43 = vmul.f32 %v743_v56, %v740_v61  ;;  %v752_v9 = vmul.f32 %v750_v57, %v748_v12  ;;  %v753_v39 = vmul.f32 %v751_v60, %v748_v12 }
 0x21d   : > { %v780_v2 = vperm.slane %v1705_v58, 4  ;;  %v781_v25 = vperm.slane %v1707_v35, 4  ;;  %v762_v37 = vmul.f32 %v760_v22, %v758_v34  ;;  %v763_v18 = vmul.f32 %v761_v30, %v758_v34 }
 0x21e   : > { %v754_v31 = vadd.f32 %v752_v9, %v744_v63  ;;  %v755_v23 = vadd.f32 %v753_v39, %v745_v43  ;;  %v772_v38 = vmul.f32 %v770_v44, %v768_v59  ;;  %v773_v12 = vmul.f32 %v771_v21, %v768_v59 }
 0x21f   : > { %v782_v62 = vmul.f32 %v780_v2, %v778_v52  ;;  %v783_v11 = vmul.f32 %v781_v25, %v778_v52  ;;  %v790_v3 = vperm.slane %v1705_v58, 5  ;;  %v791_v5 = vperm.slane %v1707_v35, 5 }
 0x220   : > { %v764_v40 = vadd.f32 %v762_v37, %v754_v31  ;;  %v765_v41 = vadd.f32 %v763_v18, %v755_v23  ;;  %v800_v50 = vperm.slane %v1705_v58, 6  ;;  %v801_v16 = vperm.slane %v1707_v35, 6 }
 0x221   : > { %v798_v28 = vpop.permute.xlu1 %797  ;;  %v788_v32 = vpop.permute.xlu0 %787  ;;  %v810_v55 = vperm.slane %v1705_v58, 7  ;;  %v811_v46 = vperm.slane %v1707_v35, 7  ;;  %v859_v26 = vperm.slane %v855_v49, 2  ;;  %v860_v56 = vperm.slane %v856_v0, 2 }
 0x222   : > { %v774_v45 = vadd.f32 %v772_v38, %v764_v40  ;;  %v775_v7 = vadd.f32 %v773_v12, %v765_v41  ;;  %v792_v15 = vmul.f32 %v790_v3, %v788_v32  ;;  %v793_v19 = vmul.f32 %v791_v5, %v788_v32  ;;  %v867_v35 = vpop.permute.xlu2 %866 }
 0x223   : > { %v802_v51 = vmul.f32 %v800_v50, %v798_v28  ;;  %v803_v52 = vmul.f32 %v801_v16, %v798_v28  ;;  %v812_v43 = vmul.f32 %v810_v55, %v808_v27  ;;  %v813_v9 = vmul.f32 %v811_v46, %v808_v27 }
 0x224   : > { %v784_v34 = vadd.f32 %v782_v62, %v774_v45  ;;  %v785_v4 = vadd.f32 %v783_v11, %v775_v7  ;;  %v873_v39 = vperm.slane %v869_v20, 3  ;;  %v874_v44 = vperm.slane %v870_v8, 3 }
 0x226   : > { %v794_v53 = vadd.f32 %v792_v15, %v784_v34  ;;  %v795_v14 = vadd.f32 %v793_v19, %v785_v4  ;;  %v875_v28 = vmul.f32 %v873_v39, %v867_v35  ;;  %v876_v38 = vmul.f32 %v874_v44, %v867_v35 }
 0x228   : > { %v804_v60 = vadd.f32 %v802_v51, %v794_v53  ;;  %v805_v63 = vadd.f32 %v803_v52, %v795_v14 }
 0x22a   : > { %v827_v54 = vpop.permute.xlu1 %826  ;;  %v853_v57 = vpop.permute.xlu0 %852  ;;  %v814_v30 = vadd.f32 %v812_v43, %v804_v60  ;;  %v815_v31 = vadd.f32 %v813_v9, %v805_v63 }
 0x22b   : > { %v835_v59 = vmul.f32 %v833_v29, %v827_v54  ;;  %v836_v61 = vmul.f32 %v834_v48, %v827_v54  ;;  %v861_v58 = vmul.f32 %v859_v26, %v853_v57  ;;  %v862_v22 = vmul.f32 %v860_v56, %v853_v57 }
 0x22d   : > { %v849_v21 = vadd.f32 %v847_v33, %v835_v59  ;;  %v850_v6 = vadd.f32 %v848_v1, %v836_v61 }
 0x22f   : > { %v863_v37 = vadd.f32 %v861_v58, %v849_v21  ;;  %v864_v18 = vadd.f32 %v862_v22, %v850_v6 }
 0x231   : > { %v877_v40 = vadd.f32 %v875_v28, %v863_v37  ;;  %v878_v41 = vadd.f32 %v876_v38, %v864_v18 }
 0x233   : > { %v818_v23 = vpop.permute.xlu1 %817 }
 0x234   : > { %v820_v2 = vadd.f32 %v818_v23, %v814_v30  ;;  %v821_v25 = vadd.f32 %v818_v23, %v815_v31 }
 0x236   : > { %v822_v27 = vmax.f32 %v820_v2, 0.0  ;;  %v823_v12 = vmax.f32 %v821_v25, 0.0 }
 0x238   : > { %v879_v42 = vadd.f32 %v877_v40, %v822_v27  ;;  %v880_v17 = vadd.f32 %v878_v41, %v823_v12 }
 0x23c   : > { %v883_v62 = vpop.permute.xlu1 %882 }
 0x23d   : > { %v885_v11 = vadd.f32 %v883_v62, %v879_v42  ;;  %v886_v45 = vadd.f32 %v883_v62, %v880_v17 }
 0x23f   : > { %887 = vst [vmem:[%s328_s25] sm:$0xff] %v885_v11 }
 0x240   : > { %888 = vst [vmem:[%s328_s25 + $0x8] sm:$0xff] %v886_v45 }
 0x241   : > { %1211 = shalt.err (!%p1208_p8)
}
 0x242   : > { %1016 = dma.vmem_to_hbm [thread:$0]  (%p1359_p5), %s904_s26, 256, %s906_s10, %s890_s9  }
 0x243 PF: > { %p1033_p9 = scmp.ge.s32.totalorder %s1254_s30, 2  ;;  %s917_s18 = sand.u32 1, %s1242_s27  }
 0x244   : > { %s918_s22 = scalar_lea.sflag [#allocation4], %s917_s18 }
 0x245   : > { %p1026_p10 = pnand %p1033_p9, %p1363_p6 }
 0x247   : > { %p1027_p11 = pneg %p1026_p10 }
 0x249   : > { %1237 = dma.done.wait (%p1027_p11), %s918_s22, 256  }
 0x24a   : > { %1239 = vsyncadd (%p1027_p11), %s918_s22, 4294967040  ;;  %p20_p12 = scmp.ge.s32.totalorder %s1346_s11, 4   ;;  %s1777_s27 = smov %s1246_s28 }
 0x24b   : > { %s1778_s28 = smov %s1250_s29  ;;  %s1779_s29 = smov %s1357_s14 }
 0x24c   : > { %s1780_s30 = smov %s1346_s11  ;;  %22 = sbr.rel (!%p20_p12) target bundleno = 5 (0x5), region = 99 }
 0x251   :  { %924 = vsyncpa [#allocation3], 1 }
 0x252   :  { %926 = vsyncpa [#allocation3 + $0x1], 1 }
 0x253   :  { %927 = vsyncpa [#allocation6], 1 }
 0x254   :  { %928 = vsyncpa [#allocation4], 1 }
 0x255   :  { %930 = vsyncpa [#allocation4 + $0x1], 1 }

</bundles_post_ra>
